<compile_context>
chip_gen: v7x
topology: tpu7x:2x2x1
jax: 0.10.0
libtpu: 0.0.40
codegen_flags: <defaults>
</compile_context>

<pallas_src>
import functools

import jax
import jax.numpy as jnp
from jax import lax
from jax.experimental import pallas as pl
from jax.experimental.pallas import tpu as pltpu

_EPS = 1e-5  # nn.LayerNorm default


def _cnn_layer_norm_kernel(x_ref, gamma_ref, beta_ref, o_ref):
    # x_ref: (bc_tile, F, t_tile)   gamma_ref / beta_ref: (F, 1)
    f = x_ref.shape[1]
    inv_f = 1.0 / f

    # Pass 1: mean over the feature (sublane) axis, accumulated in f32
    # directly from the native-dtype block (no full-block f32 copy just for
    # the reduction).
    mean = jnp.sum(x_ref[...], axis=1, keepdims=True,
                   dtype=jnp.float32) * inv_f                  # (bc, 1, t)

    # Pass 2: centered variance (numerically stable).  `d` is reused for the
    # normalization itself, so it is the only block-sized f32 temp.
    d = x_ref[...].astype(jnp.float32) - mean                  # (bc, F, t)
    var = jnp.sum(d * d, axis=1, keepdims=True) * inv_f        # (bc, 1, t)
    inv = lax.rsqrt(var + _EPS)

    gamma = gamma_ref[...].astype(jnp.float32)[None, :, :]     # (1, F, 1)
    beta = beta_ref[...].astype(jnp.float32)[None, :, :]       # (1, F, 1)

    o_ref[...] = (d * inv * gamma + beta).astype(o_ref.dtype)


@functools.lru_cache(maxsize=None)
def _vmem_soft_cap_bytes():
    """~75% of this chip's per-core VMEM (headroom for Mosaic scratch/sems)."""
    cap = 64 << 20  # conservative fallback = v7x per-TC VMEM
    try:
        info = pltpu.get_tpu_info()
        cap = int(getattr(info, "vmem_capacity_bytes", cap) or cap)
    except Exception:
        pass
    return cap * 3 // 4


def _choose_tiles(bc, f, t, itemsize, vmem_soft_cap):
    """Pick (bc_tile, t_tile): large HBM-friendly blocks under an honest VMEM model."""
    # Footprint per block element:
    #   2x double-buffered input + 2x double-buffered output (native dtype)
    #   + ~3 block-sized f32 elementwise temps inside the kernel.
    per_elem = 4 * itemsize + 3 * 4
    max_block_elems = max(128, (vmem_soft_cap - (2 << 20)) // per_elem)

    # Lane (time) tile first: it sets the contiguous HBM run length per DMA
    # descriptor and the store lane-density.  Full T is always layout-legal;
    # otherwise use a multiple of 128 (the cdiv grid masks the tail block).
    cands = [t] + [m for m in (2048, 1024, 512, 256, 128) if m < t]
    t_tile = cands[-1]
    for c in cands:
        if f * c <= max_block_elems:
            t_tile = c
            break
    # NOTE: for tiny T (< 128) the lane axis is under-occupied and stores are
    # masked; production speech shapes (large T) do not hit this cliff.
    # TODO(synk): for T << 128 fold several (b, c) rows into the lane axis.

    # Grow bc_tile only with whatever element budget is left.
    bc_tile = max(1, min(bc, max_block_elems // max(1, f * t_tile)))
    return bc_tile, t_tile


@jax.jit
def cnn_layer_norm(x, gamma, beta):
    """x: (B, C, num_feats, time) -> same shape, LayerNorm over num_feats."""
    B, C, F, T = x.shape
    BC = B * C
    itemsize = jnp.dtype(x.dtype).itemsize
    cdiv = lambda a, b: -(-a // b)

    # Free reshape (leading dims merge, no data movement).
    x3 = x.reshape(BC, F, T)
    gamma2 = gamma.reshape(F, 1)
    beta2 = beta.reshape(F, 1)

    vmem_soft_cap = _vmem_soft_cap_bytes()
    bc_tile, t_tile = _choose_tiles(BC, F, T, itemsize, vmem_soft_cap)

    # Keep >= 2 grid steps so megacore (v7x, 2 TCs) can shard the parallel axes.
    if cdiv(BC, bc_tile) * cdiv(T, t_tile) < 2:
        if BC >= 2:
            bc_tile = cdiv(BC, 2)
        elif T >= 256:
            t_tile = max(128, (T // 2) // 128 * 128)

    grid = (cdiv(BC, bc_tile), cdiv(T, t_tile))

    # Honest VMEM accounting for the blocks actually chosen.
    block_elems = bc_tile * F * t_tile
    footprint = (4 * itemsize + 3 * 4) * block_elems + (2 << 20)
    vmem_limit = int(min(max(footprint, 16 << 20), vmem_soft_cap))

    out3 = pl.pallas_call(
        _cnn_layer_norm_kernel,
        out_shape=jax.ShapeDtypeStruct((BC, F, T), x.dtype),
        grid_spec=pltpu.PrefetchScalarGridSpec(
            num_scalar_prefetch=0,
            grid=grid,
            in_specs=[
                pl.BlockSpec((bc_tile, F, t_tile), lambda i, j: (i, 0, j)),
                pl.BlockSpec((F, 1), lambda i, j: (0, 0)),
                pl.BlockSpec((F, 1), lambda i, j: (0, 0)),
            ],
            out_specs=pl.BlockSpec((bc_tile, F, t_tile),
                                   lambda i, j: (i, 0, j)),
        ),
        compiler_params=pltpu.CompilerParams(
            dimension_semantics=("parallel", "parallel"),
            vmem_limit_bytes=vmem_limit,
        ),
        cost_estimate=pl.CostEstimate(
            flops=8 * BC * F * T,
            transcendentals=BC * T,
            bytes_accessed=2 * BC * F * T * itemsize,
        ),
    )(x3, gamma2, beta2)

    return out3.reshape(B, C, F, T)


def _reference(x, gamma, beta):
    # Same math as the PyTorch forward, done directly in the (B,C,F,T) layout.
    xf = x.astype(jnp.float32)
    mean = jnp.mean(xf, axis=2, keepdims=True)
    var = jnp.mean((xf - mean) ** 2, axis=2, keepdims=True)
    g = gamma.astype(jnp.float32).reshape(1, 1, -1, 1)
    b = beta.astype(jnp.float32).reshape(1, 1, -1, 1)
    return ((xf - mean) * lax.rsqrt(var + _EPS) * g + b).astype(x.dtype)


if __name__ == "__main__":
    key = jax.random.PRNGKey(0)
    k1, k2, k3, k4, k5 = jax.random.split(key, 5)

    # Test 1: small shape consistent with the module (B, C, num_feats, time).
    B, C, num_feats, T = 2, 4, 32, 8
    x = jax.random.normal(k1, (B, C, num_feats, T), dtype=jnp.float32)
    gamma = 1.0 + 0.1 * jax.random.normal(k2, (num_feats,), dtype=jnp.float32)
    beta = 0.1 * jax.random.normal(k3, (num_feats,), dtype=jnp.float32)

    out = jax.block_until_ready(cnn_layer_norm(x, gamma, beta))
    ref = _reference(x, gamma, beta)
    assert out.shape == x.shape
    assert jnp.max(jnp.abs(out - ref)) < 5e-5

    # Test 2: lane-dense T plus a non-divisible B*C (exercises the cdiv /
    # masked-tail block path: BC=5 with bc_tile=3 -> 2 grid steps, last partial).
    B2, C2, F2, T2 = 5, 1, 64, 256
    x2 = jax.random.normal(k4, (B2, C2, F2, T2), dtype=jnp.float32)
    gamma2 = 1.0 + 0.05 * jax.random.normal(k2, (F2,), dtype=jnp.float32)
    beta2 = 0.05 * jax.random.normal(k3, (F2,), dtype=jnp.float32)

    out2 = jax.block_until_ready(cnn_layer_norm(x2, gamma2, beta2))
    ref2 = _reference(x2, gamma2, beta2)
    assert out2.shape == x2.shape
    assert jnp.max(jnp.abs(out2 - ref2)) < 5e-5

    # Test 3: bf16 input, non-128-multiple T (full-T lane tile path).
    B3, C3, F3, T3 = 2, 3, 48, 250
    x3 = jax.random.normal(k5, (B3, C3, F3, T3), dtype=jnp.float32).astype(jnp.bfloat16)
    gamma3 = jnp.ones((F3,), dtype=jnp.float32)
    beta3 = jnp.zeros((F3,), dtype=jnp.float32)

    out3 = jax.block_until_ready(cnn_layer_norm(x3, gamma3, beta3))
    ref3 = _reference(x3, gamma3, beta3)
    assert out3.shape == x3.shape
    assert jnp.max(jnp.abs(out3.astype(jnp.float32)
                           - ref3.astype(jnp.float32))) < 5e-2

    print("KERNEL_OK")
</pallas_src>

<mosaic_0001>
module attributes {stable_mosaic.version = 11 : i64} {
  func.func @_cnn_layer_norm_kernel(%arg0: i32, %arg1: i32, %arg2: memref<4x32x8xf32, #tpu.memory_space<vmem>>, %arg3: memref<32x1xf32, #tpu.memory_space<vmem>>, %arg4: memref<32x1xf32, #tpu.memory_space<vmem>>, %arg5: memref<4x32x8xf32, #tpu.memory_space<vmem>>) attributes {dimension_semantics = [#tpu.dimension_semantics<parallel>, #tpu.dimension_semantics<parallel>], iteration_bounds = array<i64: 2, 1>, scalar_prefetch = 0 : i64, scratch_operands = 0 : i64, tpu.core_type = #tpu.core_type<tc>, window_params = [{transform_indices = @transform_0, window_bounds = array<i64: 4, 32, 8>}, {pipeline_mode = #tpu.pipeline_mode<synchronous>, transform_indices = @transform_1, window_bounds = array<i64: 32, 1>}, {pipeline_mode = #tpu.pipeline_mode<synchronous>, transform_indices = @transform_2, window_bounds = array<i64: 32, 1>}, {transform_indices = @transform_3, window_bounds = array<i64: 4, 32, 8>}]} {
    %c0 = arith.constant 0 : index
    %c0_0 = arith.constant 0 : index
    %c0_1 = arith.constant 0 : index
    %0 = vector.load %arg2[%c0, %c0_0, %c0_1] : memref<4x32x8xf32, #tpu.memory_space<vmem>>, vector<4x32x8xf32>
    %cst = arith.constant dense<0.000000e+00> : vector<4x8xf32>
    %1 = vector.multi_reduction <add>, %0, %cst [1] : vector<4x32x8xf32> to vector<4x8xf32>
    %2 = vector.shape_cast %1 : vector<4x8xf32> to vector<4x1x8xf32>
    %cst_2 = arith.constant 3.125000e-02 : f32
    %3 = vector.broadcast %cst_2 : f32 to vector<4x1x8xf32>
    %4 = arith.mulf %2, %3 : vector<4x1x8xf32>
    %c0_3 = arith.constant 0 : index
    %c0_4 = arith.constant 0 : index
    %c0_5 = arith.constant 0 : index
    %5 = vector.load %arg2[%c0_3, %c0_4, %c0_5] : memref<4x32x8xf32, #tpu.memory_space<vmem>>, vector<4x32x8xf32>
    %6 = vector.broadcast %4 : vector<4x1x8xf32> to vector<4x32x8xf32>
    %7 = arith.subf %5, %6 : vector<4x32x8xf32>
    %8 = arith.mulf %7, %7 : vector<4x32x8xf32>
    %cst_6 = arith.constant dense<0.000000e+00> : vector<4x8xf32>
    %9 = vector.multi_reduction <add>, %8, %cst_6 [1] : vector<4x32x8xf32> to vector<4x8xf32>
    %10 = vector.shape_cast %9 : vector<4x8xf32> to vector<4x1x8xf32>
    %cst_7 = arith.constant 3.125000e-02 : f32
    %11 = vector.broadcast %cst_7 : f32 to vector<4x1x8xf32>
    %12 = arith.mulf %10, %11 : vector<4x1x8xf32>
    %cst_8 = arith.constant 9.99999974E-6 : f32
    %13 = vector.broadcast %cst_8 : f32 to vector<4x1x8xf32>
    %14 = arith.addf %12, %13 : vector<4x1x8xf32>
    %15 = math.rsqrt %14 : vector<4x1x8xf32>
    %c0_9 = arith.constant 0 : index
    %c0_10 = arith.constant 0 : index
    %16 = vector.load %arg3[%c0_9, %c0_10] : memref<32x1xf32, #tpu.memory_space<vmem>>, vector<32x1xf32>
    %17 = vector.shape_cast %16 : vector<32x1xf32> to vector<1x32x1xf32>
    %c0_11 = arith.constant 0 : index
    %c0_12 = arith.constant 0 : index
    %18 = vector.load %arg4[%c0_11, %c0_12] : memref<32x1xf32, #tpu.memory_space<vmem>>, vector<32x1xf32>
    %19 = vector.shape_cast %18 : vector<32x1xf32> to vector<1x32x1xf32>
    %20 = vector.broadcast %15 : vector<4x1x8xf32> to vector<4x32x8xf32>
    %21 = arith.mulf %7, %20 : vector<4x32x8xf32>
    %22 = vector.broadcast %17 : vector<1x32x1xf32> to vector<4x32x8xf32>
    %23 = arith.mulf %21, %22 : vector<4x32x8xf32>
    %24 = vector.broadcast %19 : vector<1x32x1xf32> to vector<4x32x8xf32>
    %25 = arith.addf %23, %24 : vector<4x32x8xf32>
    %c0_13 = arith.constant 0 : index
    %c0_14 = arith.constant 0 : index
    %c0_15 = arith.constant 0 : index
    %26 = vector.load %arg5[%c0_13, %c0_14, %c0_15] : memref<4x32x8xf32, #tpu.memory_space<vmem>>, vector<4x32x8xf32>
    tpu.vector_store %arg5[%c0_13, %c0_14, %c0_15], %25 {strides = array<i32>} : memref<4x32x8xf32, #tpu.memory_space<vmem>>, vector<4x32x8xf32>,
    return
  }
  func.func @transform_0(%arg0: i32, %arg1: i32) -> (i32, i32, i32) {
    %c0_i32 = arith.constant 0 : i32
    %c0_i32_0 = arith.constant 0 : i32
    return %arg0, %c0_i32, %arg1 : i32, i32, i32
  }
  func.func @transform_1(%arg0: i32, %arg1: i32) -> (i32, i32) {
    %c0_i32 = arith.constant 0 : i32
    %c0_i32_0 = arith.constant 0 : i32
    %c0_i32_1 = arith.constant 0 : i32
    return %c0_i32, %c0_i32_0 : i32, i32
  }
  func.func @transform_2(%arg0: i32, %arg1: i32) -> (i32, i32) {
    %c0_i32 = arith.constant 0 : i32
    %c0_i32_0 = arith.constant 0 : i32
    %c0_i32_1 = arith.constant 0 : i32
    return %c0_i32, %c0_i32_0 : i32, i32
  }
  func.func @transform_3(%arg0: i32, %arg1: i32) -> (i32, i32, i32) {
    %c0_i32 = arith.constant 0 : i32
    %c0_i32_0 = arith.constant 0 : i32
    return %arg0, %c0_i32, %arg1 : i32, i32, i32
  }
}

</mosaic_0001>

<bundles_post_ra>
// kernel: cnn_layer_norm.1
= control target key start
LH: loop header
LB: loop body
LE: loop exit
PB: predicated region body
PF: predicated region fallthrough
CT: control target
= control target key end

     0   :  { %s673_s12 = smov 0   ;;  %s675_s13 = smov 0   ;;  %s971_s0 = inlined_call_operand.vmem [shape: f32[8,32,8], index: 0, kind: input, shape index: {}]   ;;  %s972_s1 = inlined_call_operand.vmem [shape: f32[32,1], index: 1, kind: input, shape index: {}]   ;;  %s973_s2 = inlined_call_operand.vmem [shape: f32[32,1], index: 2, kind: input, shape index: {}]   ;;  %s974_s3 = inlined_call_operand.vmem [shape: f32[8,32,8], index: 3, kind: output, shape index: {}]  }
   0x1   :  { %s677_s14 = smov 0  }
   0x2 LB: > { %s25_s15 = sadd.s32 1, %s646_s13  ;;  %p582_p0 = scmp.ge.s32.totalorder %s650_s14, 1  ;;  %s650_s14 = sphi %s677_s14, %s13_s14   ;;  %s646_s13 = sphi %s675_s13, %s976_s13   ;;  %s642_s12 = sphi %s673_s12, %s975_s12  }
   0x3   : > { %p27_p1 = scmp.ge.s32.totalorder %s25_s15, 2  ;;  %p158_p2 = scmp.lt.s32.totalorder %s650_s14, 3 }
   0x5   : > { %s978_s15 = smov (%p27_p1, %s25_s15), 0  ;;  %p159_p3 = pnand %p582_p0, %p158_p2 }
   0x6   : > { %v381_v0 = vld [vmem:[%s972_s1 + $0x10] sm:$0xff] (!%p159_p3)  ;;  %v379_v1 = vld [vmem:[%s972_s1] sm:$0xff] (!%p159_p3)  ;;  %v652_v2 = vmov (!%p159_p3), 0   ;;  %s583_s20 = sshll.u32 (!%p159_p3), %s642_s12, 2  ;;  %v382_v3 = vld [vmem:[%s972_s1 + $0x18] sm:$0xff] (!%p159_p3)  ;;  %vm226_vm0 = vcmask (!%p159_p3), 64512  }
   0x7   : > { %162 = sbr.rel (%p159_p3) target bundleno = 154 (0x9a), region = 32  ;;  %619 = vset.pattern.permute.xlu1 (!%p159_p3), %v652_v2  ;;  %618 = vset.pattern.permute.xlu0 (!%p159_p3), %v652_v2  ;;  %v380_v4 = vld [vmem:[%s972_s1 + $0x8] sm:$0xff] (!%p159_p3)  ;;  %p191_p4 = scmp.lt.s32.totalorder (!%p159_p3), %s583_s20, 7  ;;  %v383_v6 = vld [vmem:[%s973_s2] sm:$0xff] (!%p159_p3)  ;;  %v386_v7 = vld [vmem:[%s973_s2 + $0x18] sm:$0xff] (!%p159_p3) }
   0x8   : > { %415 = vperm.xlu1 (!%p159_p3), %619, %v381_v0   ;;  %405 = vperm.xlu0 (!%p159_p3), %618, %v379_v1   ;;  %v384_v5 = vld [vmem:[%s973_s2 + $0x8] sm:$0xff] (!%p159_p3)  ;;  %v385_v8 = vld [vmem:[%s973_s2 + $0x10] sm:$0xff] (!%p159_p3) }
   0xc   : > { %420 = vperm.xlu1 (!%p159_p3), %619, %v382_v3   ;;  %410 = vperm.xlu0 (!%p159_p3), %618, %v380_v4  }
   0xe   : > { %s980_s20 = smov (!%p191_p4, %s583_s20), 7 }
   0xf   : > { %s591_s6 = sshll.u32 %s980_s20, 5 }
  0x10   : > { %446 = vperm.xlu1 %619, %v384_v5   ;;  %441 = vperm.xlu0 %618, %v383_v6   ;;  %s723_s9 = scalar_lea.vmem %s971_s0, %s591_s6  ;;  %s921_s12 = scalar_lea.vmem %s974_s3, %s591_s6 }
  0x11   : > { %v726_v9 = vld [vmem:[%s723_s9] sm:$0xff]  ;;  %v729_v10 = vld [vmem:[%s723_s9 + $0x8] sm:$0xff]  ;;  %v748_v17 = vld [vmem:[%s723_s9 + $0x10] sm:$0xff] }
  0x12   : > { %v732_v11 = vld [vmem:[%s723_s9 + $0x20] sm:$0xff]  ;;  %v735_v12 = vld [vmem:[%s723_s9 + $0x28] sm:$0xff]  ;;  %v227_v15 = vsel %vm226_vm0, %v726_v9, 0.0  ;;  %v228_v16 = vsel %vm226_vm0, %v729_v10, 0.0  ;;  %v761_v22 = vld [vmem:[%s723_s9 + $0x30] sm:$0xff]  ;;  %v230_v27 = vsel %vm226_vm0, %v748_v17, 0.0 }
  0x13   : > { %v738_v13 = vld [vmem:[%s723_s9 + $0x40] sm:$0xff]  ;;  %v741_v14 = vld [vmem:[%s723_s9 + $0x48] sm:$0xff]  ;;  %v240_v20 = vsel %vm226_vm0, %v732_v11, 0.0  ;;  %v241_v21 = vsel %vm226_vm0, %v735_v12, 0.0  ;;  %v229_v23 = vadd.f32 %v228_v16, %v227_v15  ;;  %v768_v26 = vld [vmem:[%s723_s9 + $0x50] sm:$0xff]  ;;  %v243_v33 = vsel %vm226_vm0, %v761_v22, 0.0 }
  0x14   : > { %456 = vperm.xlu1 %619, %v386_v7   ;;  %451 = vperm.xlu0 %618, %v385_v8   ;;  %v751_v18 = vld [vmem:[%s723_s9 + $0x60] sm:$0xff]  ;;  %v754_v19 = vld [vmem:[%s723_s9 + $0x68] sm:$0xff]  ;;  %v253_v24 = vsel %vm226_vm0, %v738_v13, 0.0  ;;  %v254_v25 = vsel %vm226_vm0, %v741_v14, 0.0  ;;  %v242_v28 = vadd.f32 %v241_v21, %v240_v20  ;;  %v777_v31 = vld [vmem:[%s723_s9 + $0x18] sm:$0xff]  ;;  %v256_v37 = vsel %vm226_vm0, %v768_v26, 0.0 }
  0x15   : > { %v266_v29 = vsel %vm226_vm0, %v751_v18, 0.0  ;;  %v267_v30 = vsel %vm226_vm0, %v754_v19, 0.0  ;;  %v780_v32 = vld [vmem:[%s723_s9 + $0x70] sm:$0xff]  ;;  %v785_v34 = vld [vmem:[%s723_s9 + $0x38] sm:$0xff]  ;;  %v255_v35 = vadd.f32 %v254_v25, %v253_v24  ;;  %v231_v36 = vadd.f32 %v230_v27, %v229_v23 }
  0x16   : > { %v268_v38 = vadd.f32 %v267_v30, %v266_v29  ;;  %v790_v39 = vld [vmem:[%s723_s9 + $0x58] sm:$0xff]  ;;  %v232_v40 = vsel %vm226_vm0, %v777_v31, 0.0  ;;  %v244_v41 = vadd.f32 %v243_v33, %v242_v28  ;;  %v269_v42 = vsel %vm226_vm0, %v780_v32, 0.0 }
  0x17   : > { %v797_v43 = vld [vmem:[%s723_s9 + $0x78] sm:$0xff]  ;;  %v245_v44 = vsel %vm226_vm0, %v785_v34, 0.0  ;;  %v257_v45 = vadd.f32 %v256_v37, %v255_v35  ;;  %v233_v46 = vadd.f32 %v232_v40, %v231_v36  ;;  %v258_v47 = vsel %vm226_vm0, %v790_v39, 0.0 }
  0x18   : > { %v270_v48 = vadd.f32 %v269_v42, %v268_v38  ;;  %v246_v49 = vadd.f32 %v245_v44, %v244_v41  ;;  %v271_v50 = vsel %vm226_vm0, %v797_v43, 0.0 }
  0x19   : > { %v259_v51 = vadd.f32 %v258_v47, %v257_v45  ;;  %v234_v52 = vrot.slane %v233_v46, 4 }
  0x1a   : > { %v272_v53 = vadd.f32 %v271_v50, %v270_v48  ;;  %v247_v54 = vrot.slane %v246_v49, 4 }
  0x1b   : > { %v260_v55 = vrot.slane %v259_v51, 4  ;;  %v235_v56 = vadd.f32 %v234_v52, %v233_v46 }
  0x1c   : > { %v273_v57 = vrot.slane %v272_v53, 4  ;;  %v248_v58 = vadd.f32 %v247_v54, %v246_v49 }
  0x1d   : > { %v261_v59 = vadd.f32 %v260_v55, %v259_v51  ;;  %v236_v60 = vrot.slane %v235_v56, 2 }
  0x1e   : > { %v274_v61 = vadd.f32 %v273_v57, %v272_v53  ;;  %v249_v62 = vrot.slane %v248_v58, 2 }
  0x1f   : > { %v262_v63 = vrot.slane %v261_v59, 2  ;;  %v237_v0 = vadd.f32 %v236_v60, %v235_v56 }
  0x20   : > { %v275_v1 = vrot.slane %v274_v61, 2  ;;  %v250_v2 = vadd.f32 %v249_v62, %v248_v58 }
  0x21   : > { %v263_v3 = vadd.f32 %v262_v63, %v261_v59  ;;  %v238_v4 = vrot.slane %v237_v0, 1 }
  0x22   : > { %v276_v5 = vadd.f32 %v275_v1, %v274_v61  ;;  %v251_v6 = vrot.slane %v250_v2, 1 }
  0x23   : > { %v264_v7 = vrot.slane %v263_v3, 1  ;;  %v239_v8 = vadd.f32 %v238_v4, %v237_v0 }
  0x24   : > { %v277_v15 = vrot.slane %v276_v5, 1  ;;  %v252_v16 = vadd.f32 %v251_v6, %v250_v2 }
  0x25   : > { %v265_v20 = vadd.f32 %v264_v7, %v263_v3  ;;  %v279_v23 = vmul.f32 0.03125, %v239_v8 }
  0x26   : > { %v278_v21 = vadd.f32 %v277_v15, %v276_v5  ;;  %v280_v24 = vmul.f32 0.03125, %v252_v16 }
  0x27   : > { %v281_v25 = vmul.f32 0.03125, %v265_v20  ;;  %v806_v28 = vsub.f32 %v726_v9, %v279_v23  ;;  %v809_v29 = vsub.f32 %v729_v10, %v279_v23  ;;  %v818_v35 = vsub.f32 %v748_v17, %v279_v23 }
  0x28   : > { %v282_v27 = vmul.f32 0.03125, %v278_v21  ;;  %v812_v30 = vsub.f32 %v732_v11, %v280_v24  ;;  %v815_v33 = vsub.f32 %v735_v12, %v280_v24  ;;  %v837_v17 = vsub.f32 %v761_v22, %v280_v24 }
  0x29   : > { %v821_v36 = vsub.f32 %v738_v13, %v281_v25  ;;  %v824_v37 = vsub.f32 %v741_v14, %v281_v25  ;;  %v299_v11 = vmul.f32 %v806_v28, %v806_v28  ;;  %v300_v12 = vmul.f32 %v809_v29, %v809_v29 }
  0x2a   : > { %v827_v9 = vsub.f32 %v751_v18, %v282_v27  ;;  %v830_v10 = vsub.f32 %v754_v19, %v282_v27  ;;  %v303_v13 = vmul.f32 %v812_v30, %v812_v30  ;;  %v304_v14 = vmul.f32 %v815_v33, %v815_v33 }
  0x2b   : > { %v844_v18 = vsub.f32 %v777_v31, %v279_v23  ;;  %v847_v19 = vsub.f32 %v768_v26, %v281_v25  ;;  %v850_v38 = vsub.f32 %v780_v32, %v282_v27  ;;  %v301_v40 = vmul.f32 %v818_v35, %v818_v35 }
  0x2c   : > { %v307_v22 = vmul.f32 %v821_v36, %v821_v36  ;;  %v308_v41 = vmul.f32 %v824_v37, %v824_v37  ;;  %v311_v42 = vmul.f32 %v827_v9, %v827_v9  ;;  %v312_v31 = vmul.f32 %v830_v10, %v830_v10 }
  0x2d   : > { %v315_v26 = vsel %vm226_vm0, %v299_v11, 0.0  ;;  %v316_v32 = vsel %vm226_vm0, %v300_v12, 0.0  ;;  %v865_v44 = vsub.f32 %v785_v34, %v280_v24  ;;  %v305_v45 = vmul.f32 %v837_v17, %v837_v17 }
  0x2e   : > { %v328_v46 = vsel %vm226_vm0, %v303_v13, 0.0  ;;  %v329_v47 = vsel %vm226_vm0, %v304_v14, 0.0  ;;  %v872_v48 = vsub.f32 %v790_v39, %v281_v25  ;;  %v875_v49 = vsub.f32 %v797_v43, %v282_v27 }
  0x2f   : > { %v302_v50 = vmul.f32 %v844_v18, %v844_v18  ;;  %v309_v34 = vmul.f32 %v847_v19, %v847_v19  ;;  %v313_v51 = vmul.f32 %v850_v38, %v850_v38  ;;  %v317_v52 = vadd.f32 %v316_v32, %v315_v26 }
  0x30   : > { %v341_v53 = vsel %vm226_vm0, %v307_v22, 0.0  ;;  %v342_v54 = vsel %vm226_vm0, %v308_v41, 0.0  ;;  %v318_v39 = vsel %vm226_vm0, %v301_v40, 0.0  ;;  %v330_v55 = vadd.f32 %v329_v47, %v328_v46 }
  0x31   : > { %v354_v43 = vsel %vm226_vm0, %v311_v42, 0.0  ;;  %v355_v56 = vsel %vm226_vm0, %v312_v31, 0.0  ;;  %v306_v57 = vmul.f32 %v865_v44, %v865_v44  ;;  %v331_v58 = vsel %vm226_vm0, %v305_v45, 0.0 }
  0x32   : > { %v343_v59 = vadd.f32 %v342_v54, %v341_v53  ;;  %v310_v60 = vmul.f32 %v872_v48, %v872_v48  ;;  %v319_v61 = vadd.f32 %v318_v39, %v317_v52  ;;  %v344_v62 = vsel %vm226_vm0, %v309_v34, 0.0 }
  0x33   : > { %v356_v63 = vadd.f32 %v355_v56, %v354_v43  ;;  %v314_v0 = vmul.f32 %v875_v49, %v875_v49  ;;  %v320_v1 = vsel %vm226_vm0, %v302_v50, 0.0  ;;  %v332_v2 = vadd.f32 %v331_v58, %v330_v55 }
  0x34   : > { %v357_v3 = vsel %vm226_vm0, %v313_v51, 0.0  ;;  %v333_v4 = vsel %vm226_vm0, %v306_v57, 0.0  ;;  %v345_v5 = vadd.f32 %v344_v62, %v343_v59  ;;  %v321_v6 = vadd.f32 %v320_v1, %v319_v61 }
  0x35   : > { %v346_v7 = vsel %vm226_vm0, %v310_v60, 0.0  ;;  %v358_v8 = vadd.f32 %v357_v3, %v356_v63  ;;  %v334_v15 = vadd.f32 %v333_v4, %v332_v2  ;;  %v359_v16 = vsel %vm226_vm0, %v314_v0, 0.0 }
  0x36   : > { %v347_v20 = vadd.f32 %v346_v7, %v345_v5  ;;  %v322_v21 = vrot.slane %v321_v6, 4 }
  0x37   : > { %v360_v23 = vadd.f32 %v359_v16, %v358_v8  ;;  %v335_v24 = vrot.slane %v334_v15, 4 }
  0x38   : > { %v348_v25 = vrot.slane %v347_v20, 4  ;;  %v323_v27 = vadd.f32 %v322_v21, %v321_v6 }
  0x39   : > { %v361_v11 = vrot.slane %v360_v23, 4  ;;  %v336_v12 = vadd.f32 %v335_v24, %v334_v15 }
  0x3a   : > { %v349_v13 = vadd.f32 %v348_v25, %v347_v20  ;;  %v324_v14 = vrot.slane %v323_v27, 2 }
  0x3b   : > { %v362_v40 = vadd.f32 %v361_v11, %v360_v23  ;;  %v337_v22 = vrot.slane %v336_v12, 2 }
  0x3c   : > { %v350_v41 = vrot.slane %v349_v13, 2  ;;  %v325_v42 = vadd.f32 %v324_v14, %v323_v27 }
  0x3d   : > { %v363_v31 = vrot.slane %v362_v40, 2  ;;  %v338_v26 = vadd.f32 %v337_v22, %v336_v12 }
  0x3e   : > { %v351_v32 = vadd.f32 %v350_v41, %v349_v13  ;;  %v326_v45 = vrot.slane %v325_v42, 1 }
  0x3f   : > { %v364_v46 = vadd.f32 %v363_v31, %v362_v40  ;;  %v339_v47 = vrot.slane %v338_v26, 1 }
  0x40   : > { %v352_v50 = vrot.slane %v351_v32, 1  ;;  %v327_v34 = vadd.f32 %v326_v45, %v325_v42 }
  0x41   : > { %v365_v51 = vrot.slane %v364_v46, 1  ;;  %v340_v52 = vadd.f32 %v339_v47, %v338_v26 }
  0x42   : > { %v353_v53 = vadd.f32 %v352_v50, %v351_v32  ;;  %v367_v39 = vmul.f32 0.03125, %v327_v34 }
  0x43   : > { %v366_v54 = vadd.f32 %v365_v51, %v364_v46  ;;  %v368_v55 = vmul.f32 0.03125, %v340_v52 }
  0x44   : > { %v369_v43 = vmul.f32 0.03125, %v353_v53  ;;  %v371_v57 = vadd.f32 1e-05, %v367_v39 }
  0x45   : > { %v370_v56 = vmul.f32 0.03125, %v366_v54  ;;  %v372_v58 = vadd.f32 1e-05, %v368_v55 }
  0x46   : > { %v373_v59 = vadd.f32 1e-05, %v369_v43  ;;  %620 = vrsqrt.f32 %v371_v57 }
  0x47   : > { %v374_v60 = vadd.f32 1e-05, %v370_v56  ;;  %622 = vrsqrt.f32 %v372_v58 }
  0x48   : > { %624 = vrsqrt.f32 %v373_v59 }
  0x49   : > { %626 = vrsqrt.f32 %v374_v60 }
  0x50   : > { %v621_v61 = vpop.eup %620 }
  0x51   : > { %v623_v0 = vpop.eup %622  ;;  %v388_v2 = vmul.f32 %v621_v61, %v809_v29  ;;  %v387_v5 = vmul.f32 %v621_v61, %v806_v28  ;;  %v390_v16 = vmul.f32 %v621_v61, %v844_v18  ;;  %v389_v20 = vmul.f32 %v621_v61, %v818_v35 }
  0x52   : > { %v625_v1 = vpop.eup %624  ;;  %v392_v3 = vmul.f32 %v623_v0, %v815_v33  ;;  %v391_v6 = vmul.f32 %v623_v0, %v812_v30  ;;  %v394_v33 = vmul.f32 %v623_v0, %v865_v44  ;;  %v393_v23 = vmul.f32 %v623_v0, %v837_v17 }
  0x53   : > { %v627_v4 = vpop.eup %626  ;;  %v396_v15 = vmul.f32 %v625_v1, %v824_v37  ;;  %v395_v21 = vmul.f32 %v625_v1, %v821_v36  ;;  %v398_v25 = vmul.f32 %v625_v1, %v872_v48 }
  0x54   : > { %v400_v29 = vmul.f32 %v627_v4, %v830_v10  ;;  %v399_v28 = vmul.f32 %v627_v4, %v827_v9  ;;  %v402_v36 = vmul.f32 %v627_v4, %v875_v49  ;;  %v397_v9 = vmul.f32 %v625_v1, %v847_v19 }
  0x55   : > { %v401_v44 = vmul.f32 %v627_v4, %v850_v38 }
  0x87   : > { %v901_v62 = vpop.permute.xlu1 %415  ;;  %v406_v63 = vpop.permute.xlu0 %405 }
  0x88   : > { %v423_v27 = vmul.f32 %v406_v63, %v387_v5  ;;  %v427_v37 = vmul.f32 %v406_v63, %v391_v6  ;;  %v431_v48 = vmul.f32 %v406_v63, %v395_v21  ;;  %v435_v40 = vmul.f32 %v406_v63, %v399_v28 }
  0x89   : > { %v425_v26 = vmul.f32 %v901_v62, %v389_v20  ;;  %v429_v32 = vmul.f32 %v901_v62, %v393_v23  ;;  %v433_v51 = vmul.f32 %v901_v62, %v397_v9  ;;  %v437_v39 = vmul.f32 %v901_v62, %v401_v44 }
  0x8b   : > { %v421_v7 = vpop.permute.xlu1 %420  ;;  %v411_v8 = vpop.permute.xlu0 %410 }
  0x8c   : > { %v424_v30 = vmul.f32 %v411_v8, %v388_v2  ;;  %v428_v24 = vmul.f32 %v411_v8, %v392_v3  ;;  %v432_v10 = vmul.f32 %v411_v8, %v396_v15  ;;  %v436_v12 = vmul.f32 %v411_v8, %v400_v29 }
  0x8d   : > { %v426_v49 = vmul.f32 %v421_v7, %v390_v16  ;;  %v430_v41 = vmul.f32 %v421_v7, %v394_v33  ;;  %v434_v46 = vmul.f32 %v421_v7, %v398_v25  ;;  %v438_v34 = vmul.f32 %v421_v7, %v402_v36 }
  0x8f   : > { %v447_v11 = vpop.permute.xlu1 %446  ;;  %v442_v35 = vpop.permute.xlu0 %441 }
  0x90   : > { %v460_v17 = vadd.f32 %v447_v11, %v424_v30  ;;  %v464_v18 = vadd.f32 %v447_v11, %v428_v24  ;;  %v459_v13 = vadd.f32 %v442_v35, %v423_v27  ;;  %v463_v14 = vadd.f32 %v442_v35, %v427_v37 }
  0x91   : > { %v468_v22 = vadd.f32 %v447_v11, %v432_v10  ;;  %v472_v19 = vadd.f32 %v447_v11, %v436_v12  ;;  %v467_v42 = vadd.f32 %v442_v35, %v431_v48  ;;  %v471_v45 = vadd.f32 %v442_v35, %v435_v40 }
  0x92   : > { %476 = vst.msk [vmem:[%s921_s12 + $0x8] sm:$0xff] %vm226_vm0, %v460_v17  ;;  %480 = vst.msk [vmem:[%s921_s12 + $0x28] sm:$0xff] %vm226_vm0, %v464_v18 }
  0x93   : > { %475 = vst.msk [vmem:[%s921_s12] sm:$0xff] %vm226_vm0, %v459_v13  ;;  %v457_v38 = vpop.permute.xlu1 %456  ;;  %v452_v31 = vpop.permute.xlu0 %451  ;;  %484 = vst.msk [vmem:[%s921_s12 + $0x48] sm:$0xff] %vm226_vm0, %v468_v22 }
  0x94   : > { %479 = vst.msk [vmem:[%s921_s12 + $0x20] sm:$0xff] %vm226_vm0, %v463_v14  ;;  %v462_v47 = vadd.f32 %v457_v38, %v426_v49  ;;  %v466_v50 = vadd.f32 %v457_v38, %v430_v41  ;;  %488 = vst.msk [vmem:[%s921_s12 + $0x68] sm:$0xff] %vm226_vm0, %v472_v19  ;;  %v461_v52 = vadd.f32 %v452_v31, %v425_v26 }
  0x95   : > { %483 = vst.msk [vmem:[%s921_s12 + $0x40] sm:$0xff] %vm226_vm0, %v467_v42  ;;  %v465_v53 = vadd.f32 %v452_v31, %v429_v32  ;;  %487 = vst.msk [vmem:[%s921_s12 + $0x60] sm:$0xff] %vm226_vm0, %v471_v45  ;;  %v470_v54 = vadd.f32 %v457_v38, %v434_v46  ;;  %v474_v55 = vadd.f32 %v457_v38, %v438_v34 }
  0x96   : > { %478 = vst.msk [vmem:[%s921_s12 + $0x18] sm:$0xff] %vm226_vm0, %v462_v47  ;;  %482 = vst.msk [vmem:[%s921_s12 + $0x38] sm:$0xff] %vm226_vm0, %v466_v50  ;;  %v469_v43 = vadd.f32 %v452_v31, %v433_v51  ;;  %v473_v56 = vadd.f32 %v452_v31, %v437_v39 }
  0x97   : > { %477 = vst.msk [vmem:[%s921_s12 + $0x10] sm:$0xff] %vm226_vm0, %v461_v52  ;;  %486 = vst.msk [vmem:[%s921_s12 + $0x58] sm:$0xff] %vm226_vm0, %v470_v54 }
  0x98   : > { %481 = vst.msk [vmem:[%s921_s12 + $0x30] sm:$0xff] %vm226_vm0, %v465_v53  ;;  %490 = vst.msk [vmem:[%s921_s12 + $0x78] sm:$0xff] %vm226_vm0, %v474_v55 }
  0x99   : > { %485 = vst.msk [vmem:[%s921_s12 + $0x50] sm:$0xff] %vm226_vm0, %v469_v43  ;;  %489 = vst.msk [vmem:[%s921_s12 + $0x70] sm:$0xff] %vm226_vm0, %v473_v56 }
  0x9a PF: > { %s13_s14 = sadd.s32 1, %s650_s14   ;;  %s975_s12 = smov %s646_s13 }
  0x9b   : > { %p10_p5 = scmp.ge.s32.totalorder %s13_s14, 4   ;;  %s976_s13 = smov %s978_s15 }
  0x9d   :  { %12 = sbr.rel (!%p10_p5) target bundleno = 2 (0x2), region = 62 }

</bundles_post_ra>
